<compile_context>
chip_gen: v7x
topology: tpu7x:2x2x1
jax: 0.10.0
libtpu: 0.0.40
codegen_flags: <defaults>
</compile_context>

<pallas_src>
import jax
import jax.numpy as jnp
from jax.experimental import pallas as pl
from jax.experimental.pallas import tpu as pltpu

N_EMBED = 64
HIDDEN = 4 * N_EMBED  # 256


def _round_up(x, m):
    return (x + m - 1) // m * m


def ffn_kernel(x_ref, w1_ref, b1_ref, w2_ref, b2_ref, o_ref):
    # x_ref : (bm2, 128)  bf16  -- two logical 64-wide rows packed per vreg row
    # w1_ref: (128, 512)  bf16  -- blockdiag(W1, W1)
    # b1_ref: (1, 512)    f32   -- [b1, b1]
    # w2_ref: (512, 128)  bf16  -- blockdiag(W2, W2)
    # b2_ref: (1, 128)    f32   -- [b2, b2]
    h = jnp.dot(x_ref[...], w1_ref[...], preferred_element_type=jnp.float32)
    h = jnp.maximum(h + b1_ref[...], 0.0)                       # ReLU
    o = jnp.dot(h.astype(jnp.bfloat16), w2_ref[...],
                preferred_element_type=jnp.float32)
    o_ref[...] = (o + b2_ref[...]).astype(o_ref.dtype)


def _choose_block_m(m_rows):
    # Large row tiles amortize the ~0.35us per-grid-step pipeline overhead.
    # Cap at ~M/2 so the "parallel" grid axis keeps >=2 steps (both v7x TCs
    # stay busy).  16-row granularity keeps packed (block_m//2, 128) blocks
    # (8,128)-aligned.  At block_m=1024 the per-step VMEM footprint is well
    # under the 32 MiB default scoped limit on every generation.
    if m_rows <= 16:
        return 16
    return max(16, min(1024, _round_up(-(-m_rows // 2), 16)))


def _pack_params(w1, b1, w2, b2):
    """Block-diagonal bf16 weights + duplicated f32 biases for the packed view."""
    in_d, hid = w1.shape
    z1 = jnp.zeros_like(w1)
    z2 = jnp.zeros_like(w2)
    w1b = jnp.concatenate(
        [jnp.concatenate([w1, z1], axis=1),
         jnp.concatenate([z1, w1], axis=1)], axis=0).astype(jnp.bfloat16)   # (128, 512)
    w2b = jnp.concatenate(
        [jnp.concatenate([w2, z2], axis=1),
         jnp.concatenate([z2, w2], axis=1)], axis=0).astype(jnp.bfloat16)   # (512, 128)
    b1b = jnp.concatenate([b1, b1]).reshape(1, 2 * hid).astype(jnp.float32)
    b2b = jnp.concatenate([b2, b2]).reshape(1, 2 * in_d).astype(jnp.float32)
    return w1b, b1b, w2b, b2b


def feed_forward(x, w1, b1, w2, b2, *, block_m=None):
    """x: (..., n_embed) float32. Returns same shape, float32."""
    orig_shape = x.shape
    n_embed = orig_shape[-1]
    hidden = w1.shape[1]
    assert n_embed == N_EMBED and hidden == HIDDEN

    x2d = x.reshape(-1, n_embed)
    M = x2d.shape[0]
    if block_m is None:
        block_m = _choose_block_m(M)
    assert block_m % 16 == 0

    # Ragged M: pad to a multiple of block_m, slice the result back afterwards.
    M_pad = _round_up(M, block_m)
    if M_pad != M:
        x2d = jnp.pad(x2d, ((0, M_pad - M), (0, 0)))

    # Lane-dense packed views (two 64-wide rows per 128-lane row), bf16 stream.
    xp = x2d.astype(jnp.bfloat16).reshape(M_pad // 2, 2 * n_embed)
    w1b, b1b, w2b, b2b = _pack_params(w1, b1, w2, b2)

    bm2 = block_m // 2
    grid_m = M_pad // block_m

    cost = pl.CostEstimate(
        flops=2 * (M_pad // 2) * (2 * n_embed) * (2 * hidden) * 2,   # two matmuls
        transcendentals=0,
        bytes_accessed=(M_pad * n_embed * (2 + 4)        # x in (bf16) + out (f32)
                        + (w1b.size + w2b.size) * 2      # resident bf16 weights
                        + (b1b.size + b2b.size) * 4),    # biases
    )

    out_p = pl.pallas_call(
        ffn_kernel,
        out_shape=jax.ShapeDtypeStruct((M_pad // 2, 2 * n_embed), jnp.float32),
        grid_spec=pltpu.PrefetchScalarGridSpec(
            num_scalar_prefetch=0,
            grid=(grid_m,),
            in_specs=[
                pl.BlockSpec((bm2, 2 * n_embed), lambda i: (i, 0)),          # x tile (streamed)
                pl.BlockSpec((2 * n_embed, 2 * hidden), lambda i: (0, 0)),   # W1 blk (resident)
                pl.BlockSpec((1, 2 * hidden), lambda i: (0, 0)),             # b1
                pl.BlockSpec((2 * hidden, 2 * n_embed), lambda i: (0, 0)),   # W2 blk (resident)
                pl.BlockSpec((1, 2 * n_embed), lambda i: (0, 0)),            # b2
            ],
            out_specs=pl.BlockSpec((bm2, 2 * n_embed), lambda i: (i, 0)),
        ),
        compiler_params=pltpu.CompilerParams(
            dimension_semantics=("parallel",),
        ),
        cost_estimate=cost,
    )(xp, w1b, b1b, w2b, b2b)

    out = out_p.reshape(M_pad, n_embed)[:M]
    return out.reshape(orig_shape)


def init_params(key, n_embed=N_EMBED):
    """Deterministic init mimicking nn.Linear default (uniform +/- 1/sqrt(fan_in))."""
    hidden = 4 * n_embed
    k1, k2, k3, k4 = jax.random.split(key, 4)
    bound1 = 1.0 / jnp.sqrt(n_embed)
    bound2 = 1.0 / jnp.sqrt(hidden)
    # stored as (in, out)
    w1 = jax.random.uniform(k1, (n_embed, hidden), jnp.float32, -bound1, bound1)
    b1 = jax.random.uniform(k2, (hidden,), jnp.float32, -bound1, bound1)
    w2 = jax.random.uniform(k3, (hidden, n_embed), jnp.float32, -bound2, bound2)
    b2 = jax.random.uniform(k4, (n_embed,), jnp.float32, -bound2, bound2)
    return w1, b1, w2, b2


if __name__ == "__main__":
    key = jax.random.PRNGKey(0)
    kp, kx = jax.random.split(key)
    w1, b1, w2, b2 = init_params(kp)

    B, T = 2, 8  # small demo; M = 16 rows -> single (8, 128) packed tile
    x = jax.random.normal(kx, (B, T, N_EMBED), dtype=jnp.float32)

    out = feed_forward(x, w1, b1, w2, b2)
    out = jax.block_until_ready(out)

    # reference (plain JAX, f32); kernel uses bf16 MXU operands with f32 accum,
    # so tolerance is loosened accordingly.
    ref = jnp.maximum(x @ w1 + b1, 0.0) @ w2 + b2
    assert out.shape == x.shape
    assert jnp.allclose(out, ref, atol=3e-2, rtol=3e-2), \
        float(jnp.max(jnp.abs(out - ref)))

    print("KERNEL_OK")
</pallas_src>

<mosaic_0001>
module attributes {stable_mosaic.version = 11 : i64} {
  func.func @ffn_kernel(%arg0: i32, %arg1: memref<8x128xbf16, #tpu.memory_space<vmem>>, %arg2: memref<128x512xbf16, #tpu.memory_space<vmem>>, %arg3: memref<1x512xf32, #tpu.memory_space<vmem>>, %arg4: memref<512x128xbf16, #tpu.memory_space<vmem>>, %arg5: memref<1x128xf32, #tpu.memory_space<vmem>>, %arg6: memref<8x128xf32, #tpu.memory_space<vmem>>) attributes {dimension_semantics = [#tpu.dimension_semantics<parallel>], iteration_bounds = array<i64: 1>, scalar_prefetch = 0 : i64, scratch_operands = 0 : i64, tpu.core_type = #tpu.core_type<tc>, window_params = [{transform_indices = @transform_0, window_bounds = array<i64: 8, 128>}, {pipeline_mode = #tpu.pipeline_mode<synchronous>, transform_indices = @transform_1, window_bounds = array<i64: 128, 512>}, {pipeline_mode = #tpu.pipeline_mode<synchronous>, transform_indices = @transform_2, window_bounds = array<i64: 1, 512>}, {pipeline_mode = #tpu.pipeline_mode<synchronous>, transform_indices = @transform_3, window_bounds = array<i64: 512, 128>}, {pipeline_mode = #tpu.pipeline_mode<synchronous>, transform_indices = @transform_4, window_bounds = array<i64: 1, 128>}, {transform_indices = @transform_5, window_bounds = array<i64: 8, 128>}]} {
    %c0 = arith.constant 0 : index
    %c0_0 = arith.constant 0 : index
    %0 = vector.load %arg1[%c0, %c0_0] : memref<8x128xbf16, #tpu.memory_space<vmem>>, vector<8x128xbf16>
    %c0_1 = arith.constant 0 : index
    %c0_2 = arith.constant 0 : index
    %1 = vector.load %arg2[%c0_1, %c0_2] : memref<128x512xbf16, #tpu.memory_space<vmem>>, vector<128x512xbf16>
    %cst = arith.constant dense<0.000000e+00> : vector<8x512xf32>
    %2 = tpu.matmul %0, %1, %cst {dimension_numbers = #tpu.dot_dimension_numbers<[1], [0], [0], [1], [0, 0, 1, 1], [], []>} : vector<8x128xbf16>, vector<128x512xbf16>, vector<8x512xf32> -> vector<8x512xf32>
    %c0_3 = arith.constant 0 : index
    %c0_4 = arith.constant 0 : index
    %3 = vector.load %arg3[%c0_3, %c0_4] : memref<1x512xf32, #tpu.memory_space<vmem>>, vector<1x512xf32>
    %4 = vector.broadcast %3 : vector<1x512xf32> to vector<8x512xf32>
    %5 = arith.addf %2, %4 : vector<8x512xf32>
    %cst_5 = arith.constant 0.000000e+00 : f32
    %6 = vector.broadcast %cst_5 : f32 to vector<8x512xf32>
    %7 = arith.maximumf %5, %6 : vector<8x512xf32>
    %8 = arith.truncf %7 : vector<8x512xf32> to vector<8x512xbf16>
    %c0_6 = arith.constant 0 : index
    %c0_7 = arith.constant 0 : index
    %9 = vector.load %arg4[%c0_6, %c0_7] : memref<512x128xbf16, #tpu.memory_space<vmem>>, vector<512x128xbf16>
    %cst_8 = arith.constant dense<0.000000e+00> : vector<8x128xf32>
    %10 = tpu.matmul %8, %9, %cst_8 {dimension_numbers = #tpu.dot_dimension_numbers<[1], [0], [0], [1], [0, 0, 1, 1], [], []>} : vector<8x512xbf16>, vector<512x128xbf16>, vector<8x128xf32> -> vector<8x128xf32>
    %c0_9 = arith.constant 0 : index
    %c0_10 = arith.constant 0 : index
    %11 = vector.load %arg5[%c0_9, %c0_10] : memref<1x128xf32, #tpu.memory_space<vmem>>, vector<1x128xf32>
    %12 = vector.broadcast %11 : vector<1x128xf32> to vector<8x128xf32>
    %13 = arith.addf %10, %12 : vector<8x128xf32>
    %c0_11 = arith.constant 0 : index
    %c0_12 = arith.constant 0 : index
    %14 = vector.load %arg6[%c0_11, %c0_12] : memref<8x128xf32, #tpu.memory_space<vmem>>, vector<8x128xf32>
    tpu.vector_store %arg6[%c0_11, %c0_12], %13 {strides = array<i32>} : memref<8x128xf32, #tpu.memory_space<vmem>>, vector<8x128xf32>,
    return
  }
  func.func @transform_0(%arg0: i32) -> (i32, i32) {
    %c0_i32 = arith.constant 0 : i32
    %c0_i32_0 = arith.constant 0 : i32
    return %arg0, %c0_i32 : i32, i32
  }
  func.func @transform_1(%arg0: i32) -> (i32, i32) {
    %c0_i32 = arith.constant 0 : i32
    %c0_i32_0 = arith.constant 0 : i32
    %c0_i32_1 = arith.constant 0 : i32
    return %c0_i32, %c0_i32_0 : i32, i32
  }
  func.func @transform_2(%arg0: i32) -> (i32, i32) {
    %c0_i32 = arith.constant 0 : i32
    %c0_i32_0 = arith.constant 0 : i32
    %c0_i32_1 = arith.constant 0 : i32
    return %c0_i32, %c0_i32_0 : i32, i32
  }
  func.func @transform_3(%arg0: i32) -> (i32, i32) {
    %c0_i32 = arith.constant 0 : i32
    %c0_i32_0 = arith.constant 0 : i32
    %c0_i32_1 = arith.constant 0 : i32
    return %c0_i32, %c0_i32_0 : i32, i32
  }
  func.func @transform_4(%arg0: i32) -> (i32, i32) {
    %c0_i32 = arith.constant 0 : i32
    %c0_i32_0 = arith.constant 0 : i32
    %c0_i32_1 = arith.constant 0 : i32
    return %c0_i32, %c0_i32_0 : i32, i32
  }
  func.func @transform_5(%arg0: i32) -> (i32, i32) {
    %c0_i32 = arith.constant 0 : i32
    %c0_i32_0 = arith.constant 0 : i32
    return %arg0, %c0_i32 : i32, i32
  }
}

</mosaic_0001>

<bundles_post_ra>
// kernel: tpu_custom_call.1
= control target key start
LH: loop header
LB: loop body
LE: loop exit
PB: predicated region body
PF: predicated region fallthrough
CT: control target
= control target key end

     0   :  { %10 = vsyncpa [#allocation3], 0  ;;  %s1111_s0 = inlined_call_operand.hbm [shape: bf16[8,128], index: 0, kind: input, shape index: {}]   ;;  %s1112_s1 = inlined_call_operand.hbm [shape: bf16[128,512], index: 1, kind: input, shape index: {}]   ;;  %s1113_s2 = inlined_call_operand.vmem [shape: f32[1,512], index: 2, kind: input, shape index: {}]   ;;  %s1114_s3 = inlined_call_operand.hbm [shape: bf16[512,128], index: 3, kind: input, shape index: {}]   ;;  %s1115_s4 = inlined_call_operand.vmem [shape: f32[1,128], index: 4, kind: input, shape index: {}]   ;;  %s1116_s5 = inlined_call_operand.hbm [shape: f32[8,128], index: 5, kind: output, shape index: {}]  }
   0x1   :  { %11 = vsyncpa [#allocation6], 0 }
   0x2   :  { %12 = vsyncpa [#allocation4], 0  ;;  %s1018_s18 = smov [#allocation5]   ;;  %s924_s22 = scalar_lea.hbm %s1112_s1, 4096 }
   0x3   :  { %s28_s19 = sshll.u32 %s1018_s18, 4  ;;  %p925_p0 = scmp.ne.s32.totalorder %s1112_s1, %s924_s22  ;;  %s29_s19 = int_to_ptr.vmem [resolvable:$true] %s28_s19 }
   0x4   :  { %p928_p1 = scmp.lt.u32.totalorder %s924_s22, %s1112_s1 }
   0x6   :  { %p930_p2 = pnand %p928_p1, %p925_p0 }
   0x8   :  { %933 = shalt.err (!%p930_p2)
}
   0x9   :  { %s934_s27 = scalar_lea.vmem %s29_s19, 4096  ;;  %p939_p4 = scmp.lt.s32.totalorder %s29_s19, %s29_s19 }
   0xa   :  { %p935_p3 = scmp.ne.s32.totalorder %s29_s19, %s934_s27  ;;  %p940_p5 = scmp.lt.s32.totalorder %s934_s27, %s934_s27 }
   0xc   :  { %p941_p6 = por %p940_p5, %p939_p4 }
   0xe   :  { %p942_p7 = pnand %p941_p6, %p935_p3 }
  0x10   :  { %945 = shalt.err (!%p942_p7)
}
  0x11   :  { %s1019_s28 = smov 256   ;;  %s1020_s29 = smov 16  }
  0x12   :  { %34 = dma.hbm_to_vmem [thread:$0]  %s1112_s1, 4096, %s29_s19, [#allocation6], %s1019_s28, %s1019_s28, %s1020_s29  }
  0x13   :  { %s1021_s7 = smov [#allocation2]   ;;  %s1022_s9 = smov [#allocation7]  }
  0x14   :  { %s19_s8 = sshll.u32 %s1021_s7, 4  ;;  %s42_s10 = sshll.u32 %s1022_s9, 4  ;;  %s20_s8 = int_to_ptr.vmem [resolvable:$true] %s19_s8  ;;  %s43_s10 = int_to_ptr.vmem [resolvable:$true] %s42_s10 }
  0x15   :  { %s946_s13 = scalar_lea.hbm %s1111_s0, 64 }
  0x16   :  { %p947_p8 = scmp.ne.s32.totalorder %s1111_s0, %s946_s13  ;;  %p950_p9 = scmp.lt.u32.totalorder %s946_s13, %s1111_s0 }
  0x18   :  { %p952_p10 = pnand %p950_p9, %p947_p8 }
  0x1a   :  { %955 = shalt.err (!%p952_p10)
}
  0x1b   :  { %s956_s1 = scalar_lea.vmem %s20_s8, 64  ;;  %p961_p12 = scmp.lt.s32.totalorder %s20_s8, %s20_s8 }
  0x1c   :  { %p957_p11 = scmp.ne.s32.totalorder %s20_s8, %s956_s1  ;;  %p962_p13 = scmp.lt.s32.totalorder %s956_s1, %s956_s1 }
  0x1e   :  { %p963_p0 = por %p962_p13, %p961_p12 }
  0x20   :  { %p964_p1 = pnand %p963_p0, %p957_p11 }
  0x22   :  { %967 = shalt.err (!%p964_p1)
}
  0x23   :  { %22 = dma.hbm_to_vmem [thread:$0]  %s1111_s0, 64, %s20_s8, [#allocation3]  }
  0x24   :  { %s968_s22 = scalar_lea.hbm %s1114_s3, 4096 }
  0x25   :  { %p969_p2 = scmp.ne.s32.totalorder %s1114_s3, %s968_s22  ;;  %p972_p3 = scmp.lt.u32.totalorder %s968_s22, %s1114_s3 }
  0x27   :  { %p974_p4 = pnand %p972_p3, %p969_p2 }
  0x29   :  { %977 = shalt.err (!%p974_p4)
}
  0x2a   :  { %s978_s27 = scalar_lea.vmem %s43_s10, 4096  ;;  %p983_p6 = scmp.lt.s32.totalorder %s43_s10, %s43_s10 }
  0x2b   :  { %p979_p5 = scmp.ne.s32.totalorder %s43_s10, %s978_s27  ;;  %p984_p7 = scmp.lt.s32.totalorder %s978_s27, %s978_s27 }
  0x2d   :  { %p985_p8 = por %p984_p7, %p983_p6 }
  0x2f   :  { %p986_p9 = pnand %p985_p8, %p979_p5 }
  0x31   :  { %989 = shalt.err (!%p986_p9)
}
  0x32   :  { %s1023_s0 = smov 64   ;;  %s1024_s28 = smov 4  }
  0x33   :  { %48 = dma.hbm_to_vmem [thread:$0]  %s1114_s3, 4096, %s43_s10, [#allocation6], %s1023_s0, %s1023_s0, %s1024_s28  }
  0x34   :  { %1012 = dma.done.wait [#allocation3], 64  }
  0x35   :  { %1013 = vsyncadd [#allocation3], 4294967232 }
  0x36   :  { %1014 = dma.done.wait [#allocation6], 8192  }
  0x37   :  { %1015 = vsyncadd [#allocation6], 4294959104  ;;  %v1025_v0 = vmov 0   ;;  %v844_v1 = vld [vmem:[#allocation5 + $0x4] ss:$16 sps:$4 sm:$0xff]   ;;  %v896_v38 = vld [vmem:[#allocation7 + $0x48] sm:$0xff]  }
  0x38   :  { %308 = vmatprep.mubr.bf16.mxu0 %v1025_v0  ;;  %349 = vmatprep.mubr.bf16.mxu1 %v1025_v0  ;;  %v846_v2 = vld [vmem:[#allocation5 + $0xc] ss:$16 sps:$4 sm:$0xff]   ;;  %v848_v3 = vld [vmem:[#allocation5] ss:$16 sps:$4 sm:$0xff]   ;;  %v849_v4 = vld [vmem:[#allocation5 + $0x8] ss:$16 sps:$4 sm:$0xff]  }
  0x39   :  { %276 = vmatprep.subr.bf16.mxu0 %v844_v1  ;;  %317 = vmatprep.subr.bf16.mxu1 %v846_v2  ;;  %v850_v5 = vld [vmem:[#allocation5 + $0x24] ss:$16 sps:$4 sm:$0xff]   ;;  %v852_v6 = vld [vmem:[#allocation5 + $0x2c] ss:$16 sps:$4 sm:$0xff]   ;;  %v854_v7 = vld [vmem:[#allocation5 + $0x20] ss:$16 sps:$4 sm:$0xff]   ;;  %v96_v2 = vlaneseq }
  0x3a   :  { %277 = vmatpush1.bf16.msra.mxu0 %v848_v3  ;;  %318 = vmatpush1.bf16.msra.mxu1 %v849_v4  ;;  %v855_v8 = vld [vmem:[#allocation5 + $0x28] ss:$16 sps:$4 sm:$0xff]   ;;  %v856_v9 = vld [vmem:[#allocation5 + $0x44] ss:$16 sps:$4 sm:$0xff]   ;;  %v858_v10 = vld [vmem:[#allocation5 + $0x4c] ss:$16 sps:$4 sm:$0xff]  }
  0x3b   :  { %278 = vmatprep.subr.bf16.mxu0 %v850_v5  ;;  %319 = vmatprep.subr.bf16.mxu1 %v852_v6  ;;  %v860_v11 = vld [vmem:[#allocation5 + $0x40] ss:$16 sps:$4 sm:$0xff]   ;;  %v861_v12 = vld [vmem:[#allocation5 + $0x48] ss:$16 sps:$4 sm:$0xff]   ;;  %v862_v13 = vld [vmem:[#allocation5 + $0x64] ss:$16 sps:$4 sm:$0xff]  }
  0x3c   :  { %v864_v14 = vld [vmem:[#allocation5 + $0x6c] ss:$16 sps:$4 sm:$0xff]   ;;  %v866_v15 = vld [vmem:[#allocation5 + $0x60] ss:$16 sps:$4 sm:$0xff]   ;;  %v867_v16 = vld [vmem:[#allocation5 + $0x68] ss:$16 sps:$4 sm:$0xff]  }
  0x3d   :  { %v868_v17 = vld [vmem:[#allocation5 + $0x84] ss:$16 sps:$4 sm:$0xff]   ;;  %v870_v18 = vld [vmem:[#allocation5 + $0x8c] ss:$16 sps:$4 sm:$0xff]   ;;  %v872_v19 = vld [vmem:[#allocation5 + $0x80] ss:$16 sps:$4 sm:$0xff]  }
  0x3e   :  { %279 = vmatpush1.bf16.msra.mxu0 %v854_v7  ;;  %320 = vmatpush1.bf16.msra.mxu1 %v855_v8  ;;  %v873_v20 = vld [vmem:[#allocation5 + $0x88] ss:$16 sps:$4 sm:$0xff]   ;;  %v874_v21 = vld [vmem:[#allocation5 + $0xa4] ss:$16 sps:$4 sm:$0xff]   ;;  %v876_v22 = vld [vmem:[#allocation5 + $0xac] ss:$16 sps:$4 sm:$0xff]  }
  0x3f   :  { %280 = vmatprep.subr.bf16.mxu0 %v856_v9  ;;  %321 = vmatprep.subr.bf16.mxu1 %v858_v10  ;;  %v878_v23 = vld [vmem:[#allocation5 + $0xa0] ss:$16 sps:$4 sm:$0xff]   ;;  %v879_v24 = vld [vmem:[#allocation5 + $0xa8] ss:$16 sps:$4 sm:$0xff]   ;;  %v880_v25 = vld [vmem:[#allocation5 + $0xc4] ss:$16 sps:$4 sm:$0xff]  }
  0x40   :  { %v882_v26 = vld [vmem:[#allocation5 + $0xcc] ss:$16 sps:$4 sm:$0xff]   ;;  %v884_v27 = vld [vmem:[#allocation5 + $0xc0] ss:$16 sps:$4 sm:$0xff]   ;;  %v885_v28 = vld [vmem:[#allocation5 + $0xc8] ss:$16 sps:$4 sm:$0xff]  }
  0x41   :  { %v886_v29 = vld [vmem:[#allocation5 + $0xe4] ss:$16 sps:$4 sm:$0xff]   ;;  %v888_v30 = vld [vmem:[#allocation5 + $0xec] ss:$16 sps:$4 sm:$0xff]   ;;  %v890_v31 = vld [vmem:[#allocation5 + $0xe0] ss:$16 sps:$4 sm:$0xff]  }
  0x42   :  { %281 = vmatpush1.bf16.msra.mxu0 %v860_v11  ;;  %322 = vmatpush1.bf16.msra.mxu1 %v861_v12  ;;  %v891_v32 = vld [vmem:[#allocation5 + $0xe8] ss:$16 sps:$4 sm:$0xff]   ;;  %v892_v33 = vld [vmem:[#allocation7 + $0x40] sm:$0xff]   ;;  %v61_v35 = vld [vmem:[#allocation2] sm:$0xf]  ;;  %v97_v3 = vshrl.u32 %v96_v2, 7 }
  0x43   :  { %282 = vmatprep.subr.bf16.mxu0 %v862_v13  ;;  %323 = vmatprep.subr.bf16.mxu1 %v864_v14  ;;  %v893_v34 = vld [vmem:[#allocation7 + $0xc0] sm:$0xff]   ;;  %v897_v39 = vld [vmem:[#allocation7 + $0xc8] sm:$0xff]   ;;  %v900_v42 = vld [vmem:[#allocation7 + $0x50] sm:$0xff]   ;;  %s1026_s8 = smov [#allocation8]  }
  0x44   :  { %v894_v36 = vld [vmem:[#allocation7] sm:$0xff]   ;;  %v898_v40 = vld [vmem:[#allocation7 + $0x8] sm:$0xff]   ;;  %v901_v43 = vld [vmem:[#allocation7 + $0xd0] sm:$0xff]   ;;  %v98_v4 = vsub.s32 0, %v97_v3  ;;  %v106_v5 = vsub.s32 2, %v97_v3  ;;  %v102_v7 = vsub.s32 1, %v97_v3 }
  0x45   :  { %v895_v37 = vld [vmem:[#allocation7 + $0x80] sm:$0xff]   ;;  %v899_v41 = vld [vmem:[#allocation7 + $0x88] sm:$0xff]   ;;  %v902_v44 = vld [vmem:[#allocation7 + $0x10] sm:$0xff]   ;;  %v110_v8 = vsub.s32 3, %v97_v3  ;;  %s716_s9 = sshll.u32 %s1026_s8, 4  ;;  %s717_s9 = int_to_ptr.vmem [resolvable:$true] %s716_s9 }
  0x46   :  { %283 = vmatpush1.bf16.msra.mxu0 %v866_v15  ;;  %324 = vmatpush1.bf16.msra.mxu1 %v867_v16  ;;  %v903_v45 = vld [vmem:[#allocation7 + $0x90] sm:$0xff]   ;;  %v904_v46 = vld [vmem:[#allocation7 + $0x58] sm:$0xff]   ;;  %v908_v50 = vld [vmem:[#allocation7 + $0x60] sm:$0xff]   ;;  %s990_s10 = scalar_lea.vmem %s717_s9, 128  ;;  %p995_p11 = scmp.lt.s32.totalorder %s717_s9, %s717_s9 }
  0x47   :  { %284 = vmatprep.subr.bf16.mxu0 %v868_v17  ;;  %325 = vmatprep.subr.bf16.mxu1 %v870_v18  ;;  %v905_v47 = vld [vmem:[#allocation7 + $0xd8] sm:$0xff]   ;;  %v909_v51 = vld [vmem:[#allocation7 + $0xe0] sm:$0xff]   ;;  %v912_v54 = vld [vmem:[#allocation7 + $0x68] sm:$0xff]   ;;  %p991_p10 = scmp.ne.s32.totalorder %s717_s9, %s990_s10  ;;  %p996_p12 = scmp.lt.s32.totalorder %s990_s10, %s990_s10 }
  0x48   :  { %v906_v48 = vld [vmem:[#allocation7 + $0x18] sm:$0xff]   ;;  %v910_v52 = vld [vmem:[#allocation7 + $0x20] sm:$0xff]   ;;  %v913_v55 = vld [vmem:[#allocation7 + $0xe8] sm:$0xff]  }
  0x49   :  { %v907_v49 = vld [vmem:[#allocation7 + $0x98] sm:$0xff]   ;;  %v911_v53 = vld [vmem:[#allocation7 + $0xa0] sm:$0xff]   ;;  %v914_v56 = vld [vmem:[#allocation7 + $0x28] sm:$0xff]   ;;  %p997_p13 = por %p996_p12, %p995_p11 }
  0x4a   :  { %285 = vmatpush1.bf16.msra.mxu0 %v872_v19  ;;  %326 = vmatpush1.bf16.msra.mxu1 %v873_v20  ;;  %v915_v57 = vld [vmem:[#allocation7 + $0xa8] sm:$0xff]   ;;  %v916_v58 = vld [vmem:[#allocation7 + $0x70] sm:$0xff]   ;;  %v920_v62 = vld [vmem:[#allocation7 + $0x78] sm:$0xff]  }
  0x4b   :  { %286 = vmatprep.subr.bf16.mxu0 %v874_v21  ;;  %327 = vmatprep.subr.bf16.mxu1 %v876_v22  ;;  %v917_v59 = vld [vmem:[#allocation7 + $0xf0] sm:$0xff]   ;;  %v921_v63 = vld [vmem:[#allocation7 + $0xf8] sm:$0xff]   ;;  %p998_p0 = pnand %p997_p13, %p991_p10 }
  0x4c   :  { %v918_v60 = vld [vmem:[#allocation7 + $0x30] sm:$0xff]   ;;  %v922_v0 = vld [vmem:[#allocation7 + $0x38] sm:$0xff]  }
  0x4d   :  { %v919_v61 = vld [vmem:[#allocation7 + $0xb0] sm:$0xff]   ;;  %v923_v1 = vld [vmem:[#allocation7 + $0xb8] sm:$0xff]  }
  0x4e   :  { %287 = vmatpush1.bf16.msra.mxu0 %v878_v23  ;;  %328 = vmatpush1.bf16.msra.mxu1 %v879_v24  ;;  %v94_v6 = vld [vmem:[%s1113_s2] sm:$0xf] }
  0x4f   :  { %288 = vmatprep.subr.bf16.mxu0 %v880_v25  ;;  %329 = vmatprep.subr.bf16.mxu1 %v882_v26  ;;  %v99_v9 = vrot.slane %v94_v6, %v98_v4  ;;  %v107_v10 = vrot.slane %v94_v6, %v106_v5  ;;  %v103_v11 = vrot.slane %v94_v6, %v102_v7 }
  0x50   :  { %v111_v12 = vrot.slane %v94_v6, %v110_v8 }
  0x52   :  { %289 = vmatpush1.bf16.msra.mxu0 %v884_v27  ;;  %330 = vmatpush1.bf16.msra.mxu1 %v885_v28 }
  0x53   :  { %290 = vmatprep.subr.bf16.mxu0 %v886_v29  ;;  %331 = vmatprep.subr.bf16.mxu1 %v888_v30 }
  0x56   :  { %291 = vmatpush1.bf16.msra.mxu0 %v890_v31  ;;  %332 = vmatpush1.bf16.msra.mxu1 %v891_v32 }
  0x57   :  { %791 = vmatprep.subr.bf16.mxu0 %v892_v33  ;;  %813 = vmatprep.subr.bf16.mxu1 %v893_v34 }
  0x59   :  { %309 = vmatmul.mubr.bf16.vlgmr.msra.gmra.mrb[0].mxu0 %v61_v35  ;;  %350 = vmatmul.mubr.bf16.vlgmr.msra.gmra.mrb[0].mxu1 %v61_v35  ;;  %v758_v35 = vld [vmem:[%s1115_s4] ss:$0 sm:$0xff] }
  0x5a   :  { %792 = vmatpush3.bf16.msra.mxu0 %v894_v36  ;;  %814 = vmatpush3.bf16.msra.mxu1 %v895_v37 }
  0x5b   :  { %793 = vmatprep.subr.bf16.mxu0 %v896_v38  ;;  %815 = vmatprep.subr.bf16.mxu1 %v897_v39 }
  0x5e   :  { %794 = vmatpush3.bf16.msra.mxu0 %v898_v40  ;;  %816 = vmatpush3.bf16.msra.mxu1 %v899_v41 }
  0x5f   :  { %795 = vmatprep.subr.bf16.mxu0 %v900_v42  ;;  %817 = vmatprep.subr.bf16.mxu1 %v901_v43 }
  0x62   :  { %796 = vmatpush3.bf16.msra.mxu0 %v902_v44  ;;  %818 = vmatpush3.bf16.msra.mxu1 %v903_v45 }
  0x63   :  { %797 = vmatprep.subr.bf16.mxu0 %v904_v46  ;;  %819 = vmatprep.subr.bf16.mxu1 %v905_v47 }
  0x66   :  { %798 = vmatpush3.bf16.msra.mxu0 %v906_v48  ;;  %820 = vmatpush3.bf16.msra.mxu1 %v907_v49 }
  0x67   :  { %799 = vmatprep.subr.bf16.mxu0 %v908_v50  ;;  %821 = vmatprep.subr.bf16.mxu1 %v909_v51 }
  0x6a   :  { %800 = vmatpush3.bf16.msra.mxu0 %v910_v52  ;;  %822 = vmatpush3.bf16.msra.mxu1 %v911_v53 }
  0x6b   :  { %801 = vmatprep.subr.bf16.mxu0 %v912_v54  ;;  %823 = vmatprep.subr.bf16.mxu1 %v913_v55 }
  0x6e   :  { %802 = vmatpush3.bf16.msra.mxu0 %v914_v56  ;;  %824 = vmatpush3.bf16.msra.mxu1 %v915_v57 }
  0x6f   :  { %803 = vmatprep.subr.bf16.mxu0 %v916_v58  ;;  %825 = vmatprep.subr.bf16.mxu1 %v917_v59 }
  0x72   :  { %804 = vmatpush3.bf16.msra.mxu0 %v918_v60  ;;  %826 = vmatpush3.bf16.msra.mxu1 %v919_v61 }
  0x73   :  { %805 = vmatprep.subr.bf16.mxu0 %v920_v62  ;;  %827 = vmatprep.subr.bf16.mxu1 %v921_v63 }
  0x76   :  { %806 = vmatpush3.bf16.msra.mxu0 %v922_v0  ;;  %828 = vmatpush3.bf16.msra.mxu1 %v923_v1 }
 0x12c   :  { %v310_v13 = vpop.f32.mrb[0].mxu0  ;;  %v351_v14 = vpop.f32.mrb[0].mxu1 }
 0x12d   :  { %v311_v15 = vadd.f32 %v310_v13, %v99_v9  ;;  %v352_v16 = vadd.f32 %v351_v14, %v107_v10  ;;  %v312_v17 = vpop.f32.mrb[1].mxu0  ;;  %v353_v18 = vpop.f32.mrb[1].mxu1 }
 0x12e   :  { %v313_v19 = vadd.f32 %v312_v17, %v103_v11  ;;  %v354_v20 = vadd.f32 %v353_v18, %v111_v12  ;;  %v314_v21 = vpop.f32.mrb[2].mxu0  ;;  %v355_v22 = vpop.f32.mrb[2].mxu1 }
 0x12f   :  { %v358_v23 = vmax.f32 %v311_v15, 0.0  ;;  %v360_v24 = vmax.f32 %v352_v16, 0.0  ;;  %v315_v25 = vpop.f32.mrb[3].mxu0  ;;  %v356_v26 = vpop.f32.mrb[3].mxu1 }
 0x130   :  { %v359_v27 = vmax.f32 %v313_v19, 0.0  ;;  %v361_v28 = vmax.f32 %v354_v20, 0.0 }
 0x131   :  { %v364_v29 = vpack.c.bf16 %v360_v24, %v360_v24  ;;  %v362_v32 = vpack.c.bf16 %v358_v23, %v358_v23 }
 0x132   :  { %v363_v30 = vpack.c.bf16 %v359_v27, %v359_v27  ;;  %v365_v31 = vpack.c.bf16 %v361_v28, %v361_v28 }
 0x134   :  { %661 = vmatprep.mubr.bf16.mxu0 %v363_v30  ;;  %701 = vmatprep.mubr.bf16.mxu1 %v365_v31 }
 0x135   :  { %662 = vmatmul.mubr.bf16.vlgmr.msra.gmra.mrb[4].mxu0 %v362_v32  ;;  %702 = vmatmul.mubr.bf16.vlgmr.msra.gmra.mrb[4].mxu1 %v364_v29 }
 0x208   :  { %v807_v33 = vpop.f32.mrb[4].mxu0  ;;  %v829_v34 = vpop.f32.mrb[4].mxu1 }
 0x209   :  { %v808_v36 = vpop.f32.mrb[5].mxu0  ;;  %v830_v37 = vpop.f32.mrb[5].mxu1 }
 0x20a   :  { %v809_v38 = vadd.f32 %v808_v36, %v807_v33  ;;  %v831_v39 = vadd.f32 %v830_v37, %v829_v34  ;;  %v810_v40 = vpop.f32.mrb[6].mxu0  ;;  %v832_v41 = vpop.f32.mrb[6].mxu1 }
 0x20b   :  { %v811_v42 = vpop.f32.mrb[7].mxu0  ;;  %v833_v43 = vpop.f32.mrb[7].mxu1 }
 0x20c   :  { %v664_v44 = vadd.f32 %v809_v38, %v758_v35 }
 0x20e   :  { %v704_v45 = vadd.f32 %v831_v39, %v664_v44 }
 0x210   :  { %709 = vst [vmem:[#allocation8] sm:$0xff] %v704_v45 }
 0x211   :  { %1001 = shalt.err (!%p998_p0)
}
 0x212   :  { %s1002_s12 = scalar_lea.hbm %s1116_s5, 128 }
 0x213   :  { %p1003_p1 = scmp.ne.s32.totalorder %s1116_s5, %s1002_s12  ;;  %p1006_p2 = scmp.lt.u32.totalorder %s1002_s12, %s1116_s5 }
 0x215   :  { %p1008_p3 = pnand %p1006_p2, %p1003_p1 }
 0x217   :  { %1011 = shalt.err (!%p1008_p3)
}
 0x218   :  { %719 = dma.vmem_to_hbm [thread:$0]  %s717_s9, 128, %s1116_s5, [#allocation4]  }
 0x219   :  { %1016 = dma.done.wait [#allocation4], 128  }
 0x21a   :  { %1017 = vsyncadd [#allocation4], 4294967168 }
 0x21b   :  { %723 = vsyncpa [#allocation3], 1 }
 0x21c   :  { %724 = vsyncpa [#allocation6], 1 }
 0x21d   :  { %725 = vsyncpa [#allocation4], 1 }

</bundles_post_ra>
